<compile_context>
chip_gen: v7x
topology: tpu7x:2x2x1
jax: 0.10.0
libtpu: 0.0.40
codegen_flags: <defaults>
</compile_context>

<pallas_src>
import functools

import jax
import jax.numpy as jnp
from jax.experimental import pallas as pl
from jax.experimental.pallas import tpu as pltpu


# ----------------------------------------------------------------------------
# Kernel
# ----------------------------------------------------------------------------
def _head_kernel(x_ref, wqkv_ref, o_ref, *, head_size, compute_dtype):
    Bb, T, C = x_ref.shape
    H = head_size

    x = x_ref[...].astype(compute_dtype)          # (Bb, T, C)
    wqkv = wqkv_ref[...].astype(compute_dtype)    # (C, 3H), segments [K|Q|V]

    # ---- fused projections: one wide matmul on the collapsed (Bb*T, C) ----
    x2d = x.reshape(Bb * T, C)
    qkv = jnp.dot(x2d, wqkv, preferred_element_type=jnp.float32)  # (Bb*T, 3H) f32
    qkv = qkv.reshape(Bb, T, 3 * H)
    k = qkv[:, :, 0 * H:1 * H]                    # (Bb, T, H) f32
    q = qkv[:, :, 1 * H:2 * H]
    v = qkv[:, :, 2 * H:3 * H]

    # Scale q (T*H elements) instead of the (T,T) score matrix.
    q = q * jnp.float32(float(H) ** -0.5)

    # ---- attention scores: contract head dim directly (no k.T transpose) ----
    s = jnp.einsum(
        'bqd,bkd->bqk',
        q.astype(compute_dtype),
        k.astype(compute_dtype),
        preferred_element_type=jnp.float32,
    )                                             # (Bb, T, T) f32

    # ---- causal mask (finite fill value: never produces inf - inf) ----
    row = jax.lax.broadcasted_iota(jnp.int32, (T, T), 0)
    col = jax.lax.broadcasted_iota(jnp.int32, (T, T), 1)
    s = jnp.where((col <= row)[None, :, :], s, jnp.float32(-1e30))

    # ---- softmax in f32 (EUP exp + EUP approximate reciprocal) ----
    m = jnp.max(s, axis=-1, keepdims=True)
    e = jnp.exp(s - m)
    denom = jnp.sum(e, axis=-1, keepdims=True)
    p = e * pl.reciprocal(denom, approx=True)

    # dropout is identity in eval mode

    # ---- weighted aggregation of values ----
    out = jnp.einsum(
        'bqk,bkd->bqd',
        p.astype(compute_dtype),
        v.astype(compute_dtype),
        preferred_element_type=jnp.float32,
    )                                             # (Bb, T, H) f32

    # Lane-dense store: (Bb, T, H) -> (1, Bb, T*H); the wrapper reshapes back.
    o_ref[...] = out.reshape(o_ref.shape).astype(o_ref.dtype)


# ----------------------------------------------------------------------------
# Wrapper helpers
# ----------------------------------------------------------------------------
def fuse_head_weights(wk, wq, wv):
    """Fuse projection weights ONCE at init. Segment order is [K | Q | V] and
    must match the slice order inside the kernel."""
    assert wk.shape == wq.shape == wv.shape, "K/Q/V weights must share a shape"
    return jnp.concatenate([wk, wq, wv], axis=-1)   # (C, 3H)


def _tpu_generation_params():
    """(mxu_m_target, physical_vmem_bytes, two_tensorcores) with safe fallbacks."""
    mxu_m, vmem, two_tc = 256, 64 << 20, True       # conservative default (v7x-like)
    try:
        kind = jax.devices()[0].device_kind.lower()
        if "v5" in kind:
            mxu_m, vmem, two_tc = 128, 128 << 20, False
        elif "v6" in kind:
            mxu_m, vmem, two_tc = 256, 128 << 20, False
        elif "v7" in kind:
            mxu_m, vmem, two_tc = 256, 64 << 20, True
    except Exception:
        pass
    return mxu_m, vmem, two_tc


def _choose_block_b(B, T, C, H, x_bytes, mxu_m_target, vmem_budget, two_cores):
    """Largest divisor of B whose per-step working set fits the VMEM budget,
    preferring block_b*T >= MXU width; on 2-TC chips keep >= 2 grid steps."""
    def vmem_per_block(bb):
        x_tile = 2 * bb * T * C * x_bytes          # double-buffered input
        qkv = bb * T * 3 * H * 4                   # f32 projections
        scores = 3 * bb * T * T * 4                # s, e, p live in f32
        out_tile = 2 * bb * T * H * 4              # double-buffered output
        return x_tile + qkv + scores + out_tile

    divisors = [d for d in range(1, B + 1) if B % d == 0]
    block_b = 1
    for d in divisors:
        if vmem_per_block(d) <= vmem_budget:
            block_b = d
            if d * T >= mxu_m_target:
                break
    if two_cores and B >= 2 and B // block_b < 2:
        for d in reversed(divisors):
            if d <= block_b and B // d >= 2:
                block_b = d
                break
    return block_b


def head_forward(x, wqkv, *, block_b=None, compute_dtype=jnp.bfloat16):
    """x: (B, T, C); wqkv: (C, 3H) fused [K|Q|V] weight (see fuse_head_weights).
    Returns (B, T, H).

    compute_dtype controls the matmul-input precision (accumulation and the
    softmax are always f32). bf16 is the MXU peak path on v6e/v7x.
    """
    B, T, C = x.shape
    assert wqkv.shape[0] == C and wqkv.shape[-1] % 3 == 0, "wqkv must be (C, 3H)"
    H = wqkv.shape[-1] // 3

    mxu_m_target, vmem_phys, two_tc = _tpu_generation_params()
    # Leave headroom: ~70-75% of physical VMEM for the compiler, half of that
    # as the budget for our per-step working set.
    vmem_limit = (96 << 20) if vmem_phys >= (128 << 20) else (44 << 20)

    if block_b is None:
        block_b = _choose_block_b(
            B, T, C, H, x.dtype.itemsize, mxu_m_target, vmem_limit // 2, two_tc
        )
    assert B % block_b == 0, "block_b must divide B"
    n_blocks = B // block_b
    grid = (n_blocks,)

    kernel = functools.partial(
        _head_kernel, head_size=H, compute_dtype=compute_dtype
    )

    out = pl.pallas_call(
        kernel,
        # Lane-dense output slab; reshaped back to (B, T, H) below.
        out_shape=jax.ShapeDtypeStruct((n_blocks, block_b, T * H), x.dtype),
        grid_spec=pltpu.PrefetchScalarGridSpec(
            num_scalar_prefetch=0,
            grid=grid,
            in_specs=[
                pl.BlockSpec((block_b, T, C), lambda b: (b, 0, 0)),
                pl.BlockSpec((C, 3 * H), lambda b: (0, 0)),
            ],
            out_specs=pl.BlockSpec((1, block_b, T * H), lambda b: (b, 0, 0)),
        ),
        compiler_params=pltpu.CompilerParams(
            dimension_semantics=("parallel",),
            vmem_limit_bytes=vmem_limit,
        ),
    )(x, wqkv)

    return out.reshape(B, T, H)


def head_reference(x, wk, wq, wv):
    """Pure-JAX reference matching the PyTorch forward (eval mode)."""
    k = x @ wk
    q = x @ wq
    v = x @ wv
    scale = k.shape[-1] ** -0.5
    wei = jnp.einsum("btd,bsd->bts", q, k) * scale
    T = x.shape[1]
    mask = jnp.tril(jnp.ones((T, T), dtype=bool))
    wei = jnp.where(mask[None, :, :], wei, -jnp.inf)
    wei = jax.nn.softmax(wei, axis=-1)
    return jnp.einsum("bts,bsd->btd", wei, v)


if __name__ == "__main__":
    # Small shapes consistent with the module: (B, T, C) with head_size H.
    B, T, C, H = 2, 8, 32, 16

    key = jax.random.PRNGKey(0)
    kx, kk, kq, kv = jax.random.split(key, 4)

    x = jax.random.normal(kx, (B, T, C), dtype=jnp.float32)

    # nn.Linear(n_embd, head_size, bias=False) default init: U(-1/sqrt(C), 1/sqrt(C))
    bound = 1.0 / (C ** 0.5)
    wk = jax.random.uniform(kk, (C, H), jnp.float32, -bound, bound)
    wq = jax.random.uniform(kq, (C, H), jnp.float32, -bound, bound)
    wv = jax.random.uniform(kv, (C, H), jnp.float32, -bound, bound)

    # Fuse once at "init time" (hoisted out of the forward path).
    wqkv = fuse_head_weights(wk, wq, wv)

    ref = head_reference(x, wk, wq, wv)

    # f32 matmul-input path (exact up to the EUP approximate reciprocal).
    out_f32 = jax.block_until_ready(head_forward(x, wqkv, compute_dtype=jnp.float32))
    assert out_f32.shape == (B, T, H)
    assert jnp.allclose(out_f32, ref, atol=1e-2, rtol=1e-2), "f32 path mismatch"

    # Default bf16 matmul-input path (f32 accumulate + f32 softmax).
    out_bf16 = jax.block_until_ready(head_forward(x, wqkv))
    assert out_bf16.shape == (B, T, H)
    assert jnp.allclose(out_bf16, ref, atol=5e-2, rtol=5e-2), "bf16 path mismatch"

    print("KERNEL_OK")
</pallas_src>

<mosaic_0001>
module attributes {stable_mosaic.version = 11 : i64} {
  func.func @_head_kernel(%arg0: i32, %arg1: memref<1x8x32xf32, #tpu.memory_space<vmem>>, %arg2: memref<32x48xf32, #tpu.memory_space<vmem>>, %arg3: memref<1x1x128xf32, #tpu.memory_space<vmem>>) attributes {dimension_semantics = [#tpu.dimension_semantics<parallel>], iteration_bounds = array<i64: 2>, scalar_prefetch = 0 : i64, scratch_operands = 0 : i64, tpu.core_type = #tpu.core_type<tc>, window_params = [{transform_indices = @transform_0, window_bounds = array<i64: 1, 8, 32>}, {pipeline_mode = #tpu.pipeline_mode<synchronous>, transform_indices = @transform_1, window_bounds = array<i64: 32, 48>}, {transform_indices = @transform_2, window_bounds = array<i64: 1, 1, 128>}]} {
    %c0 = arith.constant 0 : index
    %c0_0 = arith.constant 0 : index
    %c0_1 = arith.constant 0 : index
    %0 = vector.load %arg1[%c0, %c0_0, %c0_1] : memref<1x8x32xf32, #tpu.memory_space<vmem>>, vector<1x8x32xf32>
    %c0_2 = arith.constant 0 : index
    %c0_3 = arith.constant 0 : index
    %1 = vector.load %arg2[%c0_2, %c0_3] : memref<32x48xf32, #tpu.memory_space<vmem>>, vector<32x48xf32>
    %2 = vector.shape_cast %0 : vector<1x8x32xf32> to vector<8x32xf32>
    %cst = arith.constant dense<0.000000e+00> : vector<8x48xf32>
    %3 = tpu.matmul %2, %1, %cst {dimension_numbers = #tpu.dot_dimension_numbers<[1], [0], [0], [1], [0, 0, 1, 1], [], []>} : vector<8x32xf32>, vector<32x48xf32>, vector<8x48xf32> -> vector<8x48xf32>
    %4 = vector.shape_cast %3 : vector<8x48xf32> to vector<1x8x48xf32>
    %5 = vector.extract_strided_slice %4 {offsets = [0, 0, 0], sizes = [1, 8, 16], strides = [1, 1, 1]} : vector<1x8x48xf32> to vector<1x8x16xf32>
    %6 = vector.extract_strided_slice %4 {offsets = [0, 0, 16], sizes = [1, 8, 16], strides = [1, 1, 1]} : vector<1x8x48xf32> to vector<1x8x16xf32>
    %7 = vector.extract_strided_slice %4 {offsets = [0, 0, 32], sizes = [1, 8, 16], strides = [1, 1, 1]} : vector<1x8x48xf32> to vector<1x8x16xf32>
    %cst_4 = arith.constant 2.500000e-01 : f32
    %8 = vector.broadcast %cst_4 : f32 to vector<1x8x16xf32>
    %9 = arith.mulf %6, %8 : vector<1x8x16xf32>
    "tpu.trace_start"() <{level = 10 : i32, message = "bqd,bkd->bqk"}> : () -> ()
    %cst_5 = arith.constant dense<0.000000e+00> : vector<1x8x8xf32>
    %10 = tpu.matmul %9, %5, %cst_5 {dimension_numbers = #tpu.dot_dimension_numbers<[2], [2], [1], [1], [0, 0, 0, 1, 1, 1], [0], [0]>} : vector<1x8x16xf32>, vector<1x8x16xf32>, vector<1x8x8xf32> -> vector<1x8x8xf32>
    "tpu.trace_stop"() : () -> ()
    %11 = tpu.iota {dimensions = array<i32: 0>} : vector<8x8xi32>
    %12 = tpu.iota {dimensions = array<i32: 1>} : vector<8x8xi32>
    %13 = arith.cmpi sle, %12, %11 : vector<8x8xi32>
    %14 = vector.shape_cast %13 : vector<8x8xi1> to vector<1x8x8xi1>
    %cst_6 = arith.constant -1.000000e+30 : f32
    %15 = vector.broadcast %cst_6 : f32 to vector<1x8x8xf32>
    %16 = arith.select %14, %10, %15 : vector<1x8x8xi1>, vector<1x8x8xf32>
    %cst_7 = arith.constant dense<0xFF800000> : vector<1x8xf32>
    %17 = vector.multi_reduction <maximumf>, %16, %cst_7 [2] : vector<1x8x8xf32> to vector<1x8xf32>
    %18 = vector.shape_cast %17 : vector<1x8xf32> to vector<1x8x1xf32>
    %19 = vector.broadcast %18 : vector<1x8x1xf32> to vector<1x8x8xf32>
    %20 = arith.subf %16, %19 : vector<1x8x8xf32>
    %21 = math.exp %20 : vector<1x8x8xf32>
    %cst_8 = arith.constant dense<0.000000e+00> : vector<1x8xf32>
    %22 = vector.multi_reduction <add>, %21, %cst_8 [2] : vector<1x8x8xf32> to vector<1x8xf32>
    %23 = vector.shape_cast %22 : vector<1x8xf32> to vector<1x8x1xf32>
    %24 = tpu.reciprocal %23 {approx = true} : vector<1x8x1xf32> -> vector<1x8x1xf32>
    %25 = vector.broadcast %24 : vector<1x8x1xf32> to vector<1x8x8xf32>
    %26 = arith.mulf %21, %25 : vector<1x8x8xf32>
    "tpu.trace_start"() <{level = 10 : i32, message = "bqk,bkd->bqd"}> : () -> ()
    %cst_9 = arith.constant dense<0.000000e+00> : vector<1x8x16xf32>
    %27 = tpu.matmul %26, %7, %cst_9 {dimension_numbers = #tpu.dot_dimension_numbers<[2], [1], [1], [2], [0, 0, 0, 1, 1, 2], [0], [0]>} : vector<1x8x8xf32>, vector<1x8x16xf32>, vector<1x8x16xf32> -> vector<1x8x16xf32>
    "tpu.trace_stop"() : () -> ()
    %28 = vector.shape_cast %27 : vector<1x8x16xf32> to vector<1x1x128xf32>
    %c0_10 = arith.constant 0 : index
    %c0_11 = arith.constant 0 : index
    %c0_12 = arith.constant 0 : index
    %29 = vector.load %arg3[%c0_10, %c0_11, %c0_12] : memref<1x1x128xf32, #tpu.memory_space<vmem>>, vector<1x1x128xf32>
    tpu.vector_store %arg3[%c0_10, %c0_11, %c0_12], %28 {strides = array<i32>} : memref<1x1x128xf32, #tpu.memory_space<vmem>>, vector<1x1x128xf32>,
    return
  }
  func.func @transform_0(%arg0: i32) -> (i32, i32, i32) {
    %c0_i32 = arith.constant 0 : i32
    %c0_i32_0 = arith.constant 0 : i32
    %c0_i32_1 = arith.constant 0 : i32
    return %arg0, %c0_i32, %c0_i32_0 : i32, i32, i32
  }
  func.func @transform_1(%arg0: i32) -> (i32, i32) {
    %c0_i32 = arith.constant 0 : i32
    %c0_i32_0 = arith.constant 0 : i32
    %c0_i32_1 = arith.constant 0 : i32
    return %c0_i32, %c0_i32_0 : i32, i32
  }
  func.func @transform_2(%arg0: i32) -> (i32, i32, i32) {
    %c0_i32 = arith.constant 0 : i32
    %c0_i32_0 = arith.constant 0 : i32
    %c0_i32_1 = arith.constant 0 : i32
    return %arg0, %c0_i32, %c0_i32_0 : i32, i32, i32
  }
}

</mosaic_0001>

<bundles_post_ra>
// kernel: tpu_custom_call.1
= control target key start
LH: loop header
LB: loop body
LE: loop exit
PB: predicated region body
PF: predicated region fallthrough
CT: control target
= control target key end

     0   :  { %7 = vsyncpa [#allocation3], 0  ;;  %s1118_s0 = inlined_call_operand.hbm [shape: f32[2,8,32], index: 0, kind: input, shape index: {}]   ;;  %s1119_s1 = inlined_call_operand.hbm [shape: f32[32,48], index: 1, kind: input, shape index: {}]   ;;  %s1120_s2 = inlined_call_operand.hbm [shape: f32[2,1,128], index: 2, kind: output, shape index: {}]  }
   0x1   :  { %9 = vsyncpa [#allocation3 + $0x1], 0 }
   0x2   :  { %10 = vsyncpa [#allocation6], 0 }
   0x3   :  { %11 = vsyncpa [#allocation4], 0 }
   0x4   :  { %13 = vsyncpa [#allocation4 + $0x1], 0  ;;  %s894_s9 = smov 0   ;;  %s896_s10 = smov 0  }
   0x5   :  { %s898_s11 = smov 0   ;;  %s900_s12 = smov 0  }
   0x6 LB: > { %s915_s13 = sadd.s32 4294967295, %s860_s12   ;;  %s605_s14 = sadd.s32 4294967294, %s860_s12   ;;  %s860_s12 = sphi %s900_s12, %s1140_s12   ;;  %s856_s11 = sphi %s898_s11, %s1139_s11   ;;  %s852_s10 = sphi %s896_s10, %s1138_s10   ;;  %s848_s9 = sphi %s894_s9, %s1137_s9  }
   0x7   : > { %p39_p0 = scmp.ne.s32.totalorder %s852_s10, %s848_s9  ;;  %p1121_p1 = scmp.eq.s32.totalorder %s915_s13, 0 }
   0x8   : > { %p90_p3 = scmp.eq.s32.totalorder %s605_s14, 1  ;;  %p606_p5 = scmp.ge.s32.totalorder %s860_s12, 1 }
   0x9   : > { %p924_p4 = por %p1121_p1, %p39_p0  ;;  %p97_p7 = scmp.lt.s32.totalorder %s860_s12, 3 }
   0xa   : > { %p929_p6 = por %p90_p3, %p39_p0  ;;  %s862_s18 = smov [#allocation5]  }
   0xb   : > { %s1124_s15 = scalar_select %p924_p4, 1, 0 }
   0xc   : > { %s1125_s16 = scalar_select %p929_p6, 1, 0 }
   0xd   : > { %p934_p8 = pnand %p606_p5, %p97_p7  ;;  %s109_s19 = sshll.u32 %s862_s18, 4  ;;  %s938_s19 = int_to_ptr.vmem [resolvable:$true] %s109_s19 }
   0xe   : > { %s950_s21 = sadd.s32 1, %s860_s12   ;;  %s26_s22 = sadd.s32 1, %s856_s11 }
   0xf   : > { %s1126_s17 = scalar_select %p934_p8, 1, 0 }
  0x10   : > { %p665_p9 = pneg %p934_p8  ;;  %s23_s23 = ssub.s32 %s860_s12, %s950_s21 }
  0x11   : > { %s732_s26 = scalar_lea.hbm %s1119_s1, 512 }
  0x12   : > { %p945_p11 = pnand %p665_p9, %p1121_p1  ;;  %p733_p12 = scmp.ne.s32.totalorder %s1119_s1, %s732_s26 }
  0x13   : > { %p739_p5 = scmp.lt.u32.totalorder %s732_s26, %s1119_s1 }
  0x14   : > { %p734_p13 = pneg %p945_p11 }
  0x16   : > { %p735_p0 = pnand %p734_p13, %p733_p12 }
  0x18   : > { %p736_p3 = pneg %p735_p0 }
  0x1a   : > { %p741_p7 = pnand %p739_p5, %p736_p3 }
  0x1c   : > { %744 = shalt.err (!%p741_p7)
}
  0x1d   : > { %s745_s3 = scalar_lea.vmem %s938_s19, 512  ;;  %p753_p2 = scmp.lt.s32.totalorder %s938_s19, %s938_s19 }
  0x1e   : > { %p746_p9 = scmp.ne.s32.totalorder %s938_s19, %s745_s3  ;;  %p754_p6 = scmp.lt.s32.totalorder %s745_s3, %s745_s3 }
  0x20   : > { %p748_p10 = pnand %p746_p9, %p734_p13  ;;  %p755_p4 = por %p754_p6, %p753_p2 }
  0x22   : > { %p749_p1 = pneg %p748_p10 }
  0x24   : > { %p756_p8 = pnand %p755_p4, %p749_p1 }
  0x26   : > { %759 = shalt.err (!%p756_p8)
}
  0x27   : > { %s863_s4 = smov 128   ;;  %s864_s5 = smov 8  }
  0x28   : > { %668 = dma.hbm_to_vmem [thread:$0]  (!%p945_p11), %s1119_s1, 512, %s938_s19, [#allocation6], %s863_s4, %s863_s4, %s864_s5  }
  0x29   : > { %p24_p2 = scmp.eq.s32.totalorder %s23_s23, 0  ;;  %p33_p1 = scmp.ne.s32.totalorder %s856_s11, %s852_s10 }
  0x2a   : > { %p34_p4 = scmp.eq.s32.totalorder %s860_s12, 0  ;;  %p678_p6 = scmp.lt.s32.totalorder %s860_s12, 2 }
  0x2b   : > { %s981_s8 = scalar_select %p24_p2, %s856_s11, %s26_s22  }
  0x2c   : > { %p35_p8 = por %p34_p4, %p33_p1  ;;  %p1128_p10 = scmp.eq.s32.totalorder %s915_s13, 1 }
  0x2d   : > { %s123_s18 = sand.u32 1, %s856_s11   ;;  %s610_s24 = sshll.u32 %s860_s12, 7 }
  0x2e   : > { %p985_p12 = por %p1128_p10, %p33_p1  ;;  %s609_s25 = sshll.u32 %s123_s18, 3 }
  0x2f   : > { %s994_s27 = scalar_lea.hbm %s1118_s0, %s610_s24  ;;  %s127_s19 = scalar_lea.vmem [#allocation2], %s609_s25 }
  0x30   : > { %s134_s22 = sshll.u32 %s127_s19, 4  ;;  %p996_p11 = pnand %p678_p6, %p35_p8  ;;  %s1000_s22 = int_to_ptr.vmem [resolvable:$true] %s134_s22 }
  0x31   : > { %s124_s28 = scalar_lea.sflag [#allocation3], %s123_s18  ;;  %s760_s29 = scalar_lea.hbm %s994_s27, 128 }
  0x32   : > { %p761_p13 = scmp.ne.s32.totalorder %s994_s27, %s760_s29  ;;  %p762_p0 = pneg %p996_p11 }
  0x33   : > { %s765_s4 = scalar_lea.hbm %s1118_s0, 256  ;;  %p766_p7 = scmp.lt.u32.totalorder %s994_s27, %s1118_s0 }
  0x34   : > { %p763_p3 = pnand %p762_p0, %p761_p13  ;;  %p767_p9 = scmp.lt.u32.totalorder %s765_s4, %s760_s29 }
  0x35   : > { %p769_p1 = scmp.lt.u32.totalorder %s760_s29, %s994_s27 }
  0x36   : > { %p764_p5 = pneg %p763_p3  ;;  %p768_p2 = por %p767_p9, %p766_p7 }
  0x38   : > { %p770_p4 = por %p769_p1, %p768_p2 }
  0x3a   : > { %p771_p6 = pnand %p770_p4, %p764_p5 }
  0x3c   : > { %774 = shalt.err (!%p771_p6)
}
  0x3d   : > { %s775_s7 = scalar_lea.vmem %s1000_s22, 128  ;;  %s865_s18 = smov [#allocation2]  }
  0x3e   : > { %p776_p8 = scmp.ne.s32.totalorder %s1000_s22, %s775_s7  ;;  %s780_s24 = sshll.u32 %s865_s18, 4  ;;  %s781_s24 = int_to_ptr.vmem [resolvable:$false] %s780_s24 }
  0x3f   : > { %s782_s25 = scalar_lea.vmem %s781_s24, 256  ;;  %p783_p3 = scmp.lt.s32.totalorder %s1000_s22, %s781_s24 }
  0x40   : > { %p778_p10 = pnand %p776_p8, %p762_p0  ;;  %p784_p7 = scmp.lt.s32.totalorder %s782_s25, %s775_s7 }
  0x42   : > { %p779_p13 = pneg %p778_p10  ;;  %p785_p9 = por %p784_p7, %p783_p3 }
  0x44   : > { %p786_p2 = pnand %p785_p9, %p779_p13 }
  0x46   : > { %789 = shalt.err (!%p786_p2)
}
  0x47   : > { %672 = dma.hbm_to_vmem [thread:$0]  (!%p996_p11), %s994_s27, 128, %s1000_s22, %s124_s28  }
  0x48   : > { %p1131_p5 = scmp.ne.s32.totalorder %s1126_s17, 0 }
  0x49   : > { %s1030_s20 = sand.u32 (!%p1131_p5), 1, %s852_s10   ;;  %p1132_p0 = scmp.ne.s32.totalorder (!%p1131_p5), %s1124_s15, 0 }
  0x4a   : > { %143 = sbr.rel (%p1131_p5) target bundleno = 1319 (0x527), region = 28  ;;  %s612_s26 = sshll.u32 (!%p1131_p5), %s1030_s20, 3 }
  0x4b   : > { %s146_s19 = scalar_lea.sflag (!%p1131_p5), [#allocation3], %s1030_s20  ;;  %s149_s29 = scalar_lea.vmem (!%p1131_p5), [#allocation2], %s612_s26 }
  0x51   : > { %835 = dma.done.wait (%p1132_p0), %s146_s19, 128  }
  0x52   : > { %837 = vsyncadd (%p1132_p0), %s146_s19, 4294967168  ;;  %p1133_p1 = scmp.eq.s32.totalorder %s915_s13, 0 }
  0x54   : > { %839 = dma.done.wait (%p1133_p1), [#allocation6], 512   ;;  %p1134_p11 = pmov %p1133_p1 }
  0x55   : > { %v866_v0 = vmov 0.0|0.0   ;;  %vm867_vm0 = vmmov 0   ;;  %v868_v1 = vmov 0.0   ;;  %v174_v2 = vld [vmem:[#allocation5] sm:$0xff]  ;;  %v175_v3 = vld [vmem:[#allocation5 + $0x8] sm:$0xff]  ;;  %v176_v4 = vld [vmem:[#allocation5 + $0x10] sm:$0xff]  ;;  %v332_v13 = vlaneseq }
  0x56   : > { %841 = vsyncadd (%p1134_p11), [#allocation6], 4294966784  ;;  %651 = vmatprep.subr.bf16.mxu0 %v866_v0  ;;  %638 = vmatprep.mubr.msk.f32.mxu0 %vm867_vm0, %v868_v1  ;;  %v652_v5 = vpack.c.bf16 %v175_v3, %v174_v2  ;;  %v177_v6 = vld [vmem:[#allocation5 + $0x18] sm:$0xff]  ;;  %vm178_vm1 = vcmask 261120   ;;  %vm256_vm2 = vcmask 130048   ;;  %s869_s15 = smov 112  }
  0x57   : > { %641 = vmatprep.subr.mxu1 %v868_v1  ;;  %643 = vmatprep.mubr.msk.f32.mxu1 %vm867_vm0, %v868_v1  ;;  %v655_v7 = vpack.c.bf16 %v177_v6, %v176_v4  ;;  %v173_v8 = vld [vmem:[%s149_s29] sm:$0xff]  ;;  %v333_v14 = vshrl.u32 %v332_v13, 7  ;;  %v335_v15 = vand.u32 127, %v332_v13  ;;  %vm338_vm4 = vcmask 64512   ;;  %s870_s17 = smov 96   ;;  %s873_s27 = smov 16  }
  0x58   : > { %653 = vmatpush3.bf16.msra.mxu0 %v652_v5  ;;  %v871_v29 = vmov 1983009808   ;;  %v872_v31 = vmov 1934713408   ;;  %s874_s22 = smov 80   ;;  %s875_s23 = smov 32  }
  0x59   : > { %654 = vmatprep.subr.bf16.mxu0 %v866_v0  ;;  %vm336_vm3 = vcmp.le.s32.totalorder %v335_v15, %v333_v14  ;;  %v428_v30 = vunpack.c.l.s4 %v871_v29  ;;  %v443_v32 = vunpack.c.l.s4 %v872_v31  ;;  %s876_s28 = smov 64   ;;  %s877_s30 = smov 48   ;;  %vm505_vm5 = vcmask 392192  }
  0x5a   : > { %vm507_vm6 = vcmask 523264   ;;  %vm509_vm7 = vcmask 654336   ;;  %vm511_vm8 = vcmask 785408   ;;  %s618_s3 = sshll.u32 %s915_s13, 4  ;;  %s172_s4 = scalar_lea.vmem [#allocation7], %s1030_s20  ;;  %vm513_vm9 = vcmask 916480  }
  0x5b   : > { %v429_v33 = vunpack.c.0.s8 %v428_v30  ;;  %v444_v34 = vunpack.c.0.s8 %v443_v32  ;;  %s529_s5 = sshll.u32 %s172_s4, 4  ;;  %s1074_s18 = scalar_lea.hbm %s1120_s2, %s618_s3  ;;  %s1076_s5 = int_to_ptr.vmem [resolvable:$true] %s529_s5 }
  0x5c   : > { %656 = vmatpush3.bf16.msra.mxu0 %v655_v7  ;;  %s517_s24 = scalar_lea.sflag [#allocation4], %s1030_s20  ;;  %s790_s25 = scalar_lea.vmem %s1076_s5, 16 }
  0x5d   : > { %v432_v35 = vsub.s32 %v429_v33, %v333_v14  ;;  %v447_v36 = vsub.s32 %v444_v34, %v333_v14  ;;  %p791_p4 = scmp.ne.s32.totalorder %s1076_s5, %s790_s25  ;;  %s878_s13 = smov [#allocation7]  }
  0x5e   : > { %s794_s26 = sshll.u32 %s878_s13, 4  ;;  %s795_s26 = int_to_ptr.vmem [resolvable:$false] %s794_s26 }
  0x5f   : > { %639 = vmatmul.mubr.msk.f32.vlgmr.msra.gmra.mrb[0].mxu0 %vm178_vm1, %v173_v8  ;;  %p792_p6 = pnand %p791_p4, %p985_p12  ;;  %s796_s19 = scalar_lea.vmem %s795_s26, 32 }
  0x60   : > { %p797_p10 = scmp.lt.s32.totalorder %s1076_s5, %s795_s26  ;;  %p798_p13 = scmp.lt.s32.totalorder %s796_s19, %s790_s25 }
  0x61   : > { %p793_p8 = pneg %p792_p6 }
  0x62   : > { %p799_p3 = por %p798_p13, %p797_p10 }
  0x64   : > { %p800_p7 = pnand %p799_p3, %p793_p8 }
 0x132   : > { %v248_v9 = vpop.f32.mrb[0].mxu0 }
 0x133   : > { %v640_v10 = vpop.f32.mrb[1].mxu0  ;;  %642 = vmatpush3.xpose.msk.msra.mxu1 %vm256_vm2, %v248_v9  ;;  %v252_v11 = vmul.f32 0.25, %v248_v9 }
 0x134   : > { %646 = vmatprep.subr.mxu1 %v868_v1 }
 0x135   : > { %254 = vrot.lane.b32.xlu0 %v252_v11, %s869_s15 }
 0x1a7   : > { %v255_v12 = vpop.permute.xlu0 %254 }
 0x1a8   : > { %644 = vmatmul.mubr.msk.f32.vlgmr.msra.gmra.mrb[0].mxu1 %vm256_vm2, %v255_v12 }
 0x1a9   : > { %648 = vmatprep.mubr.msk.f32.mxu1 %vm867_vm0, %v868_v1 }
 0x27b   : > { %v328_v16 = vpop.f32.mrb[0].mxu1 }
 0x27c   : > { %v337_v17 = vsel %vm336_vm3, %v328_v16, -1e+30  ;;  %v645_v18 = vpop.f32.mrb[1].mxu1 }
 0x27d   : > { %v339_v19 = vsel %vm338_vm4, %v337_v17, -inf }
 0x27e   : > { %340 = vmax.xlane.f32.xlu0 %v339_v19 }
 0x30b   : > { %v341_v20 = vpop.xlane.xlu0 %340 }
 0x30c   : > { %v342_v21 = vsub.f32 %v337_v17, %v341_v20 }
 0x30e   : > { %v343_v22 = vmul.f32 1.442695, %v342_v21 }
 0x310   : > { %728 = vpow2.f32 %v343_v22 }
 0x31a   : > { %v729_v23 = vpop.eup %728 }
 0x31b   : > { %v345_v24 = vsel %vm338_vm4, %v729_v23, 0.0 }
 0x31c   : > { %346 = vadd.xlane.f32.xlu1 %v345_v24 }
 0x32d   : > { %350 = vrot.lane.b32.xlu1 %v248_v9, %s870_s17 }
 0x3a9   : > { %v347_v25 = vpop.xlane.xlu1 %346 }
 0x3aa   : > { %730 = vrcp.f32 %v347_v25 }
 0x3ad   : > { %v351_v26 = vpop.permute.xlu1 %350 }
 0x3ae   : > { %647 = vmatpush3.msra.mxu1 %v351_v26 }
 0x3b4   : > { %v731_v27 = vpop.eup %730 }
 0x3b5   : > { %v349_v28 = vmul.f32 %v731_v27, %v729_v23 }
 0x3b7   : > { %649 = vmatmul.mubr.msk.f32.vlgmr.msra.gmra.mrb[2].mxu1 %vm338_vm4, %v349_v28 }
 0x48a   : > { %v422_v37 = vpop.f32.mrb[2].mxu1 }
 0x48b   : > { %v426_v38 = vcombine.high %v422_v37, %v868_v1  ;;  %v433_v39 = vrot.slane %v422_v37, %v432_v35  ;;  %v650_v40 = vpop.f32.mrb[3].mxu1 }
 0x48d   : > { %v440_v41 = vrot.slane %v426_v38, %v432_v35  ;;  %v448_v42 = vrot.slane %v433_v39, %v447_v36  ;;  %v441_v43 = vcombine.high %v433_v39, %v868_v1 }
 0x48f   : > { %v463_v44 = vrot.slane %v440_v41, %v447_v36  ;;  %v471_v45 = vcombine.high %v448_v42, %v868_v1  ;;  %v455_v47 = vrot.slane %v441_v43, %v447_v36  ;;  %v456_v48 = vcombine.high %v440_v41, %v868_v1 }
 0x491   : > { %476 = vrot.lane.b32.xlu1 %v471_v45, %s873_s27  ;;  %v473_v46 = vcombine.high %v463_v44, %v868_v1  ;;  %v472_v49 = vcombine.high %v455_v47, %v868_v1  ;;  %v470_v50 = vrot.slane %v456_v48, %v447_v36 }
 0x493   : > { %492 = vrot.lane.b32.xlu0 %v473_v46, %s874_s22  ;;  %v474_v51 = vcombine.high %v470_v50, %v868_v1 }
 0x495   : > { %480 = vrot.lane.b32.xlu1 %v455_v47, %s875_s23 }
 0x499   : > { %488 = vrot.lane.b32.xlu1 %v463_v44, %s876_s28 }
 0x49d   : > { %484 = vrot.lane.b32.xlu1 %v472_v49, %s877_s30 }
 0x4a1   : > { %496 = vrot.lane.b32.xlu1 %v470_v50, %s870_s17 }
 0x4a5   : > { %500 = vrot.lane.b32.xlu1 %v474_v51, %s869_s15 }
 0x503   : > { %v477_v52 = vpop.permute.xlu1 %476 }
 0x504   : > { %v503_v55 = vsel %vm256_vm2, %v448_v42, %v477_v52 }
 0x505   : > { %v493_v60 = vpop.permute.xlu0 %492 }
 0x507   : > { %v481_v53 = vpop.permute.xlu1 %480 }
 0x508   : > { %v504_v56 = vsel %vm178_vm1, %v503_v55, %v481_v53 }
 0x50b   : > { %v489_v54 = vpop.permute.xlu1 %488 }
 0x50f   : > { %v485_v57 = vpop.permute.xlu1 %484 }
 0x510   : > { %v506_v58 = vsel %vm505_vm5, %v504_v56, %v485_v57 }
 0x511   : > { %v508_v59 = vsel %vm507_vm6, %v506_v58, %v489_v54 }
 0x512   : > { %v510_v62 = vsel %vm509_vm7, %v508_v59, %v493_v60 }
 0x513   : > { %v497_v61 = vpop.permute.xlu1 %496 }
 0x514   : > { %v512_v63 = vsel %vm511_vm8, %v510_v62, %v497_v61 }
 0x517   : > { %v501_v0 = vpop.permute.xlu1 %500 }
 0x518   : > { %v514_v1 = vsel %vm513_vm9, %v512_v63, %v501_v0 }
 0x519   : > { %515 = vst [vmem:[%s172_s4] sm:$0x1] %v514_v1 }
 0x51a   : > { %803 = shalt.err (!%p800_p7)
}
 0x51b   : > { %s804_s20 = scalar_lea.hbm %s1074_s18, 16  ;;  %s808_s17 = scalar_lea.hbm %s1120_s2, 32 }
 0x51c   : > { %p805_p9 = scmp.ne.s32.totalorder %s1074_s18, %s804_s20  ;;  %p809_p0 = scmp.lt.u32.totalorder %s1074_s18, %s1120_s2 }
 0x51d   : > { %p810_p1 = scmp.lt.u32.totalorder %s808_s17, %s804_s20  ;;  %p812_p4 = scmp.lt.u32.totalorder %s804_s20, %s1074_s18 }
 0x51e   : > { %p806_p2 = pnand %p805_p9, %p985_p12 }
 0x51f   : > { %p811_p11 = por %p810_p1, %p809_p0 }
 0x520   : > { %p807_p5 = pneg %p806_p2 }
 0x521   : > { %p813_p6 = por %p812_p4, %p811_p11 }
 0x523   : > { %p814_p8 = pnand %p813_p6, %p807_p5 }
 0x525   : > { %817 = shalt.err (!%p814_p8)
}
 0x526   : > { %663 = dma.vmem_to_hbm [thread:$0]  (%p985_p12), %s1076_s5, 16, %s1074_s18, %s517_s24  }
 0x527 PF: > { %s541_s23 = sand.u32 1, %s848_s9   ;;  %p1135_p10 = scmp.ne.s32.totalorder %s1125_s16, 0 }
 0x528   : > { %p1136_p13 = scmp.ge.s32.totalorder %s860_s12, 2  ;;  %s542_s28 = scalar_lea.sflag [#allocation4], %s541_s23 }
 0x52a   : > { %p674_p3 = pnand %p1136_p13, %p1135_p10 }
 0x52c   : > { %843 = dma.done.wait (!%p674_p3), %s542_s28, 16  }
 0x52d   : > { %845 = vsyncadd (!%p674_p3), %s542_s28, 4294967280  ;;  %p16_p7 = scmp.ge.s32.totalorder %s950_s21, 4   ;;  %s1137_s9 = smov %s852_s10 }
 0x52e   : > { %s1138_s10 = smov %s856_s11  ;;  %s1139_s11 = smov %s981_s8 }
 0x52f   : > { %s1140_s12 = smov %s950_s21  ;;  %18 = sbr.rel (!%p16_p7) target bundleno = 6 (0x6), region = 77 }
 0x536   :  { %546 = vsyncpa [#allocation3], 1 }
 0x537   :  { %548 = vsyncpa [#allocation3 + $0x1], 1 }
 0x538   :  { %549 = vsyncpa [#allocation6], 1 }
 0x539   :  { %550 = vsyncpa [#allocation4], 1 }
 0x53a   :  { %552 = vsyncpa [#allocation4 + $0x1], 1 }

</bundles_post_ra>
